<compile_context>
chip_gen: v5e
topology: v5e:2x2
jax: 0.10.0
libtpu: 0.0.40
codegen_flags: <defaults>
</compile_context>

<pallas_src>
import functools
import math

import jax
import jax.numpy as jnp
from jax import lax
from jax.experimental import pallas as pl
from jax.experimental.pallas import tpu as pltpu

# Finite "minus infinity": keeps exp() NaN-free for rows that are fully masked
# within an individual kv tile (their garbage contribution is exactly zeroed
# once a real score arrives, which causality guarantees: kv tile 0 always
# contains column 0 <= every row, and kv tiles are visited in increasing order).
DEFAULT_MASK_VALUE = -0.7 * float(jnp.finfo(jnp.float32).max)


def _pick_tile(n, target):
    """Largest tile <= target that divides n (falls back to n itself)."""
    if n <= target:
        return n
    for t in (target, 512, 256, 128, 64, 32, 16, 8):
        if t <= target and n % t == 0:
            return t
    return n


# --------------------------------------------------------------------------
# Kernel 1: fused QKV projection  (B*T, C) @ (C, 3H) -> (B*T, 3H), lane-dense
# --------------------------------------------------------------------------
def _qkv_proj_kernel(x_ref, w_ref, o_ref):
    # Cast activations to bf16 inside the kernel (weights are pre-cast in the
    # wrapper) so the MXU gets native bf16 operands; accumulate in f32.
    x = x_ref[...].astype(jnp.bfloat16)
    o_ref[...] = jnp.dot(
        x, w_ref[...], preferred_element_type=jnp.float32
    ).astype(o_ref.dtype)


# --------------------------------------------------------------------------
# Kernel 2: causal flash attention with the kv loop inside the kernel
# --------------------------------------------------------------------------
def _flash_attn_kernel(q_ref, k_ref, v_ref, o_ref, m_scr, l_scr, acc_scr,
                       *, tq, tkv):
    # q_ref: (tq, H) bf16; k_ref/v_ref: (T, H) bf16; o_ref: (tq, H)
    qi = pl.program_id(1)
    q_start = qi * tq

    # Fresh online-softmax state for this (batch, q-tile) grid step.
    m_scr[...] = jnp.full_like(m_scr, DEFAULT_MASK_VALUE)
    l_scr[...] = jnp.zeros_like(l_scr)
    acc_scr[...] = jnp.zeros_like(acc_scr)

    q = q_ref[...]   # bf16; 1/sqrt(H) already folded into the query weights

    # Causally relevant kv tiles: [0, num_kv). Tiles in [0, num_unmasked)
    # lie strictly below the diagonal and need no mask at all.
    num_kv = (q_start + tq + tkv - 1) // tkv
    num_unmasked = (q_start + 1) // tkv
    num_masked = num_kv - num_unmasked

    def step(ki, masked):
        k_start = pl.multiple_of(ki * tkv, tkv)
        k = k_ref[pl.ds(k_start, tkv), :]
        # Contract on the head dim directly -> no k.T materialization.
        s = lax.dot_general(q, k, (((1,), (1,)), ((), ())),
                            preferred_element_type=jnp.float32)   # (tq, tkv)
        if masked:
            row = q_start + lax.broadcasted_iota(jnp.int32, (tq, tkv), 0)
            col = k_start + lax.broadcasted_iota(jnp.int32, (tq, tkv), 1)
            s = jnp.where(col <= row, s, DEFAULT_MASK_VALUE)

        m_prev = m_scr[...]
        m_new = jnp.maximum(m_prev, jnp.max(s, axis=-1, keepdims=True))
        alpha = jnp.exp(m_prev - m_new)
        p = jnp.exp(s - m_new)
        l_scr[...] = alpha * l_scr[...] + jnp.sum(p, axis=-1, keepdims=True)
        v = v_ref[pl.ds(k_start, tkv), :]
        acc_scr[...] = alpha * acc_scr[...] + jnp.dot(
            p.astype(v_ref.dtype), v, preferred_element_type=jnp.float32)
        m_scr[...] = m_new

    @pl.loop(0, num_unmasked)
    def _below_diag(ki):          # fully below the diagonal: no mask
        step(ki, masked=False)

    @pl.loop(0, num_masked)
    def _on_diag(i):              # diagonal-straddling tiles: causal mask
        step(num_unmasked + i, masked=True)

    inv_l = pl.reciprocal(l_scr[...], approx=False)
    o_ref[...] = (acc_scr[...] * inv_l).astype(o_ref.dtype)


# --------------------------------------------------------------------------
# Wrapper
# --------------------------------------------------------------------------
def head_forward(x, wk, wq, wv, *, q_tile=256, kv_tile=256, row_tile=512):
    """x: (B, T, C); wk/wq/wv: (C, H) (pre-transposed) -> (B, T, H)."""
    B, T, C = x.shape
    H = wk.shape[1]
    scale = float(H) ** -0.5

    # ---- 1) fused, lane-dense QKV projection -------------------------------
    # Fold the attention scale into the query weights (free: fuses into the
    # concat) and cast weights to bf16 for the MXU.
    wqkv = jnp.concatenate([wk, wq * scale, wv], axis=1).astype(jnp.bfloat16)
    M = B * T
    tm = _pick_tile(M, row_tile)
    x2 = x.reshape(M, C)

    qkv = pl.pallas_call(
        _qkv_proj_kernel,
        out_shape=jax.ShapeDtypeStruct((M, 3 * H), jnp.bfloat16),
        grid=(M // tm,),
        in_specs=[
            pl.BlockSpec((tm, C), lambda i: (i, 0)),
            pl.BlockSpec((C, 3 * H), lambda i: (0, 0)),
        ],
        out_specs=pl.BlockSpec((tm, 3 * H), lambda i: (i, 0)),
        compiler_params=pltpu.CompilerParams(
            dimension_semantics=("parallel",)),
    )(x2, wqkv)

    # Cheap XLA slices (wrapper side) keep the kernel's output lane-dense.
    k = qkv[:, 0 * H:1 * H].reshape(B, T, H)
    q = qkv[:, 1 * H:2 * H].reshape(B, T, H)
    v = qkv[:, 2 * H:3 * H].reshape(B, T, H)

    # ---- 2) causal flash attention (kv loop inside the kernel) --------------
    tq = _pick_tile(T, q_tile)
    tkv = _pick_tile(T, kv_tile)
    nq = T // tq

    kernel = functools.partial(_flash_attn_kernel, tq=tq, tkv=tkv)
    out = pl.pallas_call(
        kernel,
        out_shape=jax.ShapeDtypeStruct((B, T, H), x.dtype),
        grid=(B, nq),
        in_specs=[
            pl.BlockSpec((None, tq, H), lambda b, qi: (b, qi, 0)),  # q tile
            pl.BlockSpec((None, T, H), lambda b, qi: (b, 0, 0)),    # full K
            pl.BlockSpec((None, T, H), lambda b, qi: (b, 0, 0)),    # full V
        ],
        out_specs=pl.BlockSpec((None, tq, H), lambda b, qi: (b, qi, 0)),
        scratch_shapes=[
            pltpu.VMEM((tq, 1), jnp.float32),   # running max m
            pltpu.VMEM((tq, 1), jnp.float32),   # running denom l
            pltpu.VMEM((tq, H), jnp.float32),   # output accumulator
        ],
        compiler_params=pltpu.CompilerParams(
            dimension_semantics=("parallel", "parallel"),
            # Explicit and well under v7x's 32 MiB default scoped VMEM; the
            # block set here is a few hundred KiB even at T=block_size.
            vmem_limit_bytes=32 * 1024 * 1024),
    )(q, k, v)
    return out


def head_reference(x, wk, wq, wv):
    """Pure-JAX reference replicating the PyTorch forward (eval mode)."""
    k = x @ wk
    q = x @ wq
    v = x @ wv
    wei = (q @ jnp.swapaxes(k, -2, -1)) * (k.shape[-1] ** -0.5)
    T = x.shape[1]
    mask = jnp.tril(jnp.ones((T, T), dtype=bool))
    wei = jnp.where(mask, wei, -jnp.inf)
    wei = jax.nn.softmax(wei, axis=-1)
    return wei @ v


if __name__ == "__main__":
    # Small shapes consistent with the module (batch, seq <= block_size,
    # channels = n_embd scaled down, head_size).
    B, T, C, H = 2, 8, 64, 32

    key = jax.random.PRNGKey(0)
    kx, kk, kq, kv = jax.random.split(key, 4)

    x = jax.random.normal(kx, (B, T, C), dtype=jnp.float32)
    # nn.Linear-style U(-1/sqrt(C), 1/sqrt(C)) init, stored pre-transposed (C, H)
    bound = 1.0 / math.sqrt(C)
    wk = jax.random.uniform(kk, (C, H), jnp.float32, -bound, bound)
    wq = jax.random.uniform(kq, (C, H), jnp.float32, -bound, bound)
    wv = jax.random.uniform(kv, (C, H), jnp.float32, -bound, bound)

    out = head_forward(x, wk, wq, wv)
    jax.block_until_ready(out)

    ref = head_reference(x, wk, wq, wv)
    assert out.shape == (B, T, H), out.shape
    # Tolerance accounts for bf16 MXU operands (q/k/v round-trip HBM in bf16)
    # and the online-softmax reordering; all accumulation stays in f32.
    assert jnp.allclose(out, ref, atol=2e-2, rtol=2e-2), float(
        jnp.max(jnp.abs(out - ref))
    )
    print("KERNEL_OK")
</pallas_src>

<mosaic_0001>
module attributes {stable_mosaic.version = 11 : i64} {
  func.func @_qkv_proj_kernel(%arg0: i32, %arg1: memref<16x64xf32, #tpu.memory_space<vmem>>, %arg2: memref<64x96xbf16, #tpu.memory_space<vmem>>, %arg3: memref<16x96xbf16, #tpu.memory_space<vmem>>) attributes {dimension_semantics = [#tpu.dimension_semantics<parallel>], iteration_bounds = array<i64: 1>, scalar_prefetch = 0 : i64, scratch_operands = 0 : i64, tpu.core_type = #tpu.core_type<tc>, window_params = [{transform_indices = @transform_0, window_bounds = array<i64: 16, 64>}, {pipeline_mode = #tpu.pipeline_mode<synchronous>, transform_indices = @transform_1, window_bounds = array<i64: 64, 96>}, {transform_indices = @transform_2, window_bounds = array<i64: 16, 96>}]} {
    %c0 = arith.constant 0 : index
    %c0_0 = arith.constant 0 : index
    %0 = vector.load %arg1[%c0, %c0_0] : memref<16x64xf32, #tpu.memory_space<vmem>>, vector<16x64xf32>
    %1 = arith.truncf %0 : vector<16x64xf32> to vector<16x64xbf16>
    %c0_1 = arith.constant 0 : index
    %c0_2 = arith.constant 0 : index
    %2 = vector.load %arg2[%c0_1, %c0_2] : memref<64x96xbf16, #tpu.memory_space<vmem>>, vector<64x96xbf16>
    %cst = arith.constant dense<0.000000e+00> : vector<16x96xf32>
    %3 = tpu.matmul %1, %2, %cst {dimension_numbers = #tpu.dot_dimension_numbers<[1], [0], [0], [1], [0, 0, 1, 1], [], []>} : vector<16x64xbf16>, vector<64x96xbf16>, vector<16x96xf32> -> vector<16x96xf32>
    %4 = arith.truncf %3 : vector<16x96xf32> to vector<16x96xbf16>
    %c0_3 = arith.constant 0 : index
    %c0_4 = arith.constant 0 : index
    %5 = vector.load %arg3[%c0_3, %c0_4] : memref<16x96xbf16, #tpu.memory_space<vmem>>, vector<16x96xbf16>
    tpu.vector_store %arg3[%c0_3, %c0_4], %4 {strides = array<i32>} : memref<16x96xbf16, #tpu.memory_space<vmem>>, vector<16x96xbf16>,
    return
  }
  func.func @transform_0(%arg0: i32) -> (i32, i32) {
    %c0_i32 = arith.constant 0 : i32
    %c0_i32_0 = arith.constant 0 : i32
    return %arg0, %c0_i32 : i32, i32
  }
  func.func @transform_1(%arg0: i32) -> (i32, i32) {
    %c0_i32 = arith.constant 0 : i32
    %c0_i32_0 = arith.constant 0 : i32
    %c0_i32_1 = arith.constant 0 : i32
    return %c0_i32, %c0_i32_0 : i32, i32
  }
  func.func @transform_2(%arg0: i32) -> (i32, i32) {
    %c0_i32 = arith.constant 0 : i32
    %c0_i32_0 = arith.constant 0 : i32
    return %arg0, %c0_i32 : i32, i32
  }
}

</mosaic_0001>

<bundles_post_ra>
// kernel: tpu_custom_call.1
= control target key start
LH: loop header
LB: loop body
LE: loop exit
PB: predicated region body
PF: predicated region fallthrough
CT: control target
= control target key end

     0   :  { %7 = vsyncpa [#allocation3], 0  ;;  %s266_s0 = inlined_call_operand.hbm [shape: f32[16,64], index: 0, kind: input, shape index: {}]   ;;  %s267_s1 = inlined_call_operand.hbm [shape: bf16[64,96], index: 1, kind: input, shape index: {}]   ;;  %s268_s2 = inlined_call_operand.hbm [shape: bf16[16,96], index: 2, kind: output, shape index: {}]  }
   0x1   :  { %8 = vsyncpa [#allocation6], 0 }
   0x2   :  { %9 = vsyncpa [#allocation4], 0  ;;  %s14_s11 = sshll.u32 %s266_s0, 4  ;;  %s229_s12 = smov [#allocation2]   ;;  %s15_s11 = int_to_ptr.hbm [resolvable:$true] %s14_s11 }
   0x3   :  { %s16_s13 = sshll.u32 %s229_s12, 4  ;;  %s27_s16 = sshll.u32 %s267_s1, 4  ;;  %s17_s13 = int_to_ptr.vmem [resolvable:$true] %s16_s13  ;;  %s28_s16 = int_to_ptr.hbm [resolvable:$true] %s27_s16 }
   0x4   :  { %s230_s17 = smov 128   ;;  %s231_s18 = smov 8  }
   0x5   :  { %22 = dma.hbm_to_vmem [thread:$0]  %s15_s11, 256, %s17_s13, [#allocation3], %s230_s17, %s230_s17, %s231_s18  }
   0x6   :  { %s232_s19 = smov [#allocation5]   ;;  %s233_s21 = smov 64  }
   0x7   :  { %s29_s20 = sshll.u32 %s232_s19, 4  ;;  %s234_s22 = smov 4   ;;  %s30_s20 = int_to_ptr.vmem [resolvable:$true] %s29_s20 }
   0x8   :  { %35 = dma.hbm_to_vmem [thread:$0]  %s28_s16, 512, %s30_s20, [#allocation6], %s233_s21, %s233_s21, %s234_s22  }
   0x9   :  { %223 = dma.done.wait [#allocation3], 256  }
   0xa   :  { %224 = vsyncadd [#allocation3], 4294967040 }
   0xb   :  { %225 = dma.done.wait [#allocation6], 512  }
   0xc   :  { %226 = vsyncadd [#allocation6], 4294966784  ;;  %v143_v0 = vld [vmem:[#allocation5 + $0x18] sm:$0xff]  ;;  %v142_v1 = vld [vmem:[#allocation5 + $0x10] sm:$0xff]  ;;  %vm80_vm0 = vcmask 523264   ;;  %vm100_vm1 = vcmask 781312  }
   0xd   :  { %88 = vmatpush.bf16.msra.mxu0 %v143_v0  ;;  %v141_v2 = vld [vmem:[#allocation5 + $0x8] sm:$0xff]  ;;  %v140_v3 = vld [vmem:[#allocation5] sm:$0xff]  ;;  %v45_v4 = vld [vmem:[#allocation2] sm:$0xff]  ;;  %s235_s0 = smov [#allocation7]   ;;  %s109_s25 = sshll.u32 %s268_s2, 4  ;;  %s110_s25 = int_to_ptr.hbm [resolvable:$true] %s109_s25 }
   0xe   :  { %v46_v5 = vld [vmem:[#allocation2 + $0x8] sm:$0xff]  ;;  %s107_s1 = sshll.u32 %s235_s0, 4  ;;  %s108_s1 = int_to_ptr.vmem [resolvable:$true] %s107_s1 }
   0xf   :  { %v47_v6 = vpack.c.bf16 %v46_v5, %v45_v4 }
  0x11   :  { %89 = vmatpush.bf16.msra.mxu0 %v142_v1 }
  0x15   :  { %90 = vmatpush.bf16.msra.mxu0 %v141_v2 }
  0x19   :  { %91 = vmatpush.bf16.msra.mxu0 %v140_v3 }
  0x1c   :  { %139 = vmatmul.msk.bf16.vlgmr.msra.gmra.mxu0 %vm80_vm0, %v47_v6 }
  0x99   :  { %v93_v7 = vpop.f32.mrf.mxu0 }
  0x9a   :  { %v98_v8 = vpack.c.bf16 %v93_v7, %v93_v7 }
  0x9c   :  { %101 = vst.msk [vmem:[#allocation7] sm:$0xf] %vm100_vm1, %v98_v8 }
  0xa1   :  { %v95_v9 = vpop.f32.mrf.mxu0 }
  0xa2   :  { %v99_v10 = vpack.c.bf16 %v95_v9, %v95_v9 }
  0xa4   :  { %102 = vst.msk [vmem:[#allocation7 + $0x4] sm:$0xf] %vm100_vm1, %v99_v10 }
  0xa5   :  { %115 = dma.vmem_to_hbm [thread:$0]  %s108_s1, 128, %s110_s25, [#allocation4], %s233_s21, %s233_s21, %s234_s22  }
  0xa6   :  { %227 = dma.done.wait [#allocation4], 128  }
  0xa7   :  { %228 = vsyncadd [#allocation4], 4294967168 }
  0xa8   :  { %120 = vsyncpa [#allocation3], 1 }
  0xa9   :  { %121 = vsyncpa [#allocation6], 1 }
  0xaa   :  { %122 = vsyncpa [#allocation4], 1 }

</bundles_post_ra>
